<compile_context>
chip_gen: v5e
topology: v5e:2x2
jax: 0.10.0
libtpu: 0.0.40
codegen_flags: <defaults>
</compile_context>

<pallas_src>
import functools

import jax
import jax.numpy as jnp
import numpy as np
from jax.experimental import pallas as pl
from jax.experimental.pallas import tpu as pltpu


# --------------------------------------------------------------------------- #
# Kernel
# --------------------------------------------------------------------------- #
def _mixup_ce_kernel(logits_ref, y1_ref, y2_ref, lam_ref, out_ref, *, tb, batch):
    """One batch tile: logits (TB, C), y1/y2 (TB,1) i32, lam (TB,1) f32, out (TB,1) f32."""
    logits = logits_ref[...].astype(jnp.float32)                 # upcast in-kernel (bf16 ok)

    # Numerically-stable logsumexp (VPU + EUP), no full log-softmax materialized.
    m = jnp.max(logits, axis=-1, keepdims=True)                  # (TB, 1)
    z = logits - m                                               # (TB, C)
    lse = jnp.log(jnp.sum(jnp.exp(z), axis=-1, keepdims=True))   # (TB, 1)

    y1 = y1_ref[...]                                             # (TB, 1) int32
    y2 = y2_ref[...]                                             # (TB, 1) int32
    lam = lam_ref[...]                                           # (TB, 1) f32

    # Fused one-hot gather: lam + (1-lam) = 1 factors the lse term out exactly,
    # so d = lam*CE(y1) + (1-lam)*CE(y2) = lse - sum(w * z), one XLU reduce.
    col = jax.lax.broadcasted_iota(jnp.int32, logits.shape, 1)   # (TB, C)
    w = jnp.where(col == y1, lam, 0.0) + jnp.where(col == y2, 1.0 - lam, 0.0)
    d = lse - jnp.sum(w * z, axis=-1, keepdims=True)             # (TB, 1)

    # Zero rows that are only batch padding (tail tile), so host-side sum/mean is exact.
    row = pl.program_id(0) * tb + jax.lax.broadcasted_iota(jnp.int32, d.shape, 0)
    out_ref[...] = jnp.where(row < batch, d, 0.0)


# --------------------------------------------------------------------------- #
# Wrapper
# --------------------------------------------------------------------------- #
def _row_align(itemsize):
    # Native sublane packing: f32 -> 8, bf16 -> 16, int8/fp8 -> 32.
    return {4: 8, 2: 16, 1: 32}.get(itemsize, 8)


def _choose_tb(batch, n_classes, itemsize):
    """Row-tile size: logits tile ~<=2 MiB, aligned to the dtype's sublane packing."""
    align = _row_align(itemsize)
    target_bytes = 2 * 1024 * 1024
    tb = target_bytes // max(1, n_classes * itemsize)
    tb = max(align, min(1024, int(tb)))
    tb = (tb // align) * align
    b_pad = ((batch + align - 1) // align) * align
    return min(tb, b_pad)


@functools.partial(jax.jit, static_argnames=("reduction",))
def mixup_loss(output, target, reduction: str = "mean"):
    """JAX/Pallas equivalent of MixUpLoss(nn.CrossEntropyLoss()).forward."""
    output = jnp.asarray(output)          # keep input dtype (bf16 stays bf16 into the kernel)
    target = jnp.asarray(target)
    B, C = output.shape

    if target.ndim == 2:
        y1 = target[:, 0].astype(jnp.int32)
        y2 = target[:, 1].astype(jnp.int32)
        lam = target[:, 2].astype(jnp.float32)
    else:
        # Plain CE branch: y2 == y1, lam == 1 gives the identical result.
        y1 = target.astype(jnp.int32)
        y2 = y1
        lam = jnp.ones((B,), jnp.float32)

    tb = _choose_tb(B, C, output.dtype.itemsize)
    n_tiles = -(-B // tb)
    b_pad = n_tiles * tb

    if b_pad != B:
        pad = b_pad - B
        output = jnp.pad(output, ((0, pad), (0, 0)))
        y1 = jnp.pad(y1, (0, pad))
        y2 = jnp.pad(y2, (0, pad))
        lam = jnp.pad(lam, (0, pad))

    y1 = y1.reshape(b_pad, 1)
    y2 = y2.reshape(b_pad, 1)
    lam = lam.reshape(b_pad, 1)

    kernel = functools.partial(_mixup_ce_kernel, tb=tb, batch=B)

    d = pl.pallas_call(
        kernel,
        out_shape=jax.ShapeDtypeStruct((b_pad, 1), jnp.float32),
        grid=(n_tiles,),
        in_specs=[
            pl.BlockSpec((tb, C), lambda i: (i, 0)),   # logits tile
            pl.BlockSpec((tb, 1), lambda i: (i, 0)),   # y1
            pl.BlockSpec((tb, 1), lambda i: (i, 0)),   # y2
            pl.BlockSpec((tb, 1), lambda i: (i, 0)),   # lam
        ],
        out_specs=pl.BlockSpec((tb, 1), lambda i: (i, 0)),
        compiler_params=pltpu.CompilerParams(
            dimension_semantics=("parallel",),          # independent tiles -> 2 TCs on v7x
        ),
    )(output, y1, y2, lam)

    d = d[:, 0]
    if reduction == "mean":
        return jnp.sum(d) / B          # padded rows are zeroed in-kernel
    if reduction == "sum":
        return jnp.sum(d)
    return d[:B]                       # 'none'
    # TODO(synk): for very large class counts (>~8K) add a class-axis grid dim with
    # an online logsumexp; not needed for the shapes exercised here.


# --------------------------------------------------------------------------- #
# Pure-JAX reference (mirrors PyTorch MixUpLoss(CrossEntropyLoss()))
# --------------------------------------------------------------------------- #
def _reference_mixup_loss(output, target, reduction="mean"):
    logp = jax.nn.log_softmax(output.astype(jnp.float32), axis=-1)
    if target.ndim == 2:
        y1 = target[:, 0].astype(jnp.int32)
        y2 = target[:, 1].astype(jnp.int32)
        lam = target[:, 2].astype(jnp.float32)
        l1 = -jnp.take_along_axis(logp, y1[:, None], axis=1)[:, 0]
        l2 = -jnp.take_along_axis(logp, y2[:, None], axis=1)[:, 0]
        d = l1 * lam + l2 * (1.0 - lam)
    else:
        y = target.astype(jnp.int32)
        d = -jnp.take_along_axis(logp, y[:, None], axis=1)[:, 0]
    if reduction == "mean":
        return d.mean()
    if reduction == "sum":
        return d.sum()
    return d


if __name__ == "__main__":
    key = jax.random.PRNGKey(0)
    k_logits, k_y1, k_y2, k_lam = jax.random.split(key, 4)

    B, C = 8, 32
    logits = jax.random.normal(k_logits, (B, C), dtype=jnp.float32)
    y1 = jax.random.randint(k_y1, (B,), 0, C)
    y2 = jax.random.randint(k_y2, (B,), 0, C)
    lam = jax.random.uniform(k_lam, (B,), dtype=jnp.float32)
    # target layout matches the PyTorch mixup callback: [y1, y2, lam]
    target = jnp.stack([y1.astype(jnp.float32), y2.astype(jnp.float32), lam], axis=1)

    # 1) Mixup branch, all reductions, f32 logits.
    for red in ("mean", "sum", "none"):
        got = jax.block_until_ready(mixup_loss(logits, target, reduction=red))
        ref = _reference_mixup_loss(logits, target, reduction=red)
        np.testing.assert_allclose(np.asarray(got), np.asarray(ref), rtol=1e-5, atol=1e-5)

    # 2) Plain (non-mixup) 1-D integer target.
    got = jax.block_until_ready(mixup_loss(logits, y1, reduction="mean"))
    ref = _reference_mixup_loss(logits, y1, reduction="mean")
    np.testing.assert_allclose(np.asarray(got), np.asarray(ref), rtol=1e-5, atol=1e-5)

    # 3) bf16 logits go straight into the kernel (no host-side f32 cast).
    logits_bf16 = logits.astype(jnp.bfloat16)
    got = jax.block_until_ready(mixup_loss(logits_bf16, target, reduction="mean"))
    ref = _reference_mixup_loss(logits_bf16.astype(jnp.float32), target, reduction="mean")
    np.testing.assert_allclose(np.asarray(got), np.asarray(ref), rtol=1e-5, atol=1e-5)

    # 4) Batch not a multiple of the row tile (exercises padded-row masking).
    B2 = 13
    logits2 = jax.random.normal(jax.random.PRNGKey(1), (B2, C), dtype=jnp.float32)
    y1b = jax.random.randint(jax.random.PRNGKey(2), (B2,), 0, C)
    y2b = jax.random.randint(jax.random.PRNGKey(3), (B2,), 0, C)
    lamb = jax.random.uniform(jax.random.PRNGKey(4), (B2,), dtype=jnp.float32)
    target2 = jnp.stack([y1b.astype(jnp.float32), y2b.astype(jnp.float32), lamb], axis=1)
    for red in ("mean", "none"):
        got = jax.block_until_ready(mixup_loss(logits2, target2, reduction=red))
        ref = _reference_mixup_loss(logits2, target2, reduction=red)
        np.testing.assert_allclose(np.asarray(got), np.asarray(ref), rtol=1e-5, atol=1e-5)

    print("KERNEL_OK")
</pallas_src>

<mosaic_0001>
module attributes {stable_mosaic.version = 11 : i64} {
  func.func @_mixup_ce_kernel(%arg0: i32, %arg1: memref<8x32xf32, #tpu.memory_space<vmem>>, %arg2: memref<8x1xi32, #tpu.memory_space<vmem>>, %arg3: memref<8x1xi32, #tpu.memory_space<vmem>>, %arg4: memref<8x1xf32, #tpu.memory_space<vmem>>, %arg5: memref<8x1xf32, #tpu.memory_space<vmem>>) attributes {dimension_semantics = [#tpu.dimension_semantics<parallel>], iteration_bounds = array<i64: 1>, scalar_prefetch = 0 : i64, scratch_operands = 0 : i64, tpu.core_type = #tpu.core_type<tc>, window_params = [{transform_indices = @transform_0, window_bounds = array<i64: 8, 32>}, {transform_indices = @transform_1, window_bounds = array<i64: 8, 1>}, {transform_indices = @transform_2, window_bounds = array<i64: 8, 1>}, {transform_indices = @transform_3, window_bounds = array<i64: 8, 1>}, {transform_indices = @transform_4, window_bounds = array<i64: 8, 1>}]} {
    %c0 = arith.constant 0 : index
    %c0_0 = arith.constant 0 : index
    %0 = vector.load %arg1[%c0, %c0_0] : memref<8x32xf32, #tpu.memory_space<vmem>>, vector<8x32xf32>
    %cst = arith.constant dense<0xFF800000> : vector<8xf32>
    %1 = vector.multi_reduction <maximumf>, %0, %cst [1] : vector<8x32xf32> to vector<8xf32>
    %2 = vector.shape_cast %1 : vector<8xf32> to vector<8x1xf32>
    %3 = vector.broadcast %2 : vector<8x1xf32> to vector<8x32xf32>
    %4 = arith.subf %0, %3 : vector<8x32xf32>
    %5 = math.exp %4 : vector<8x32xf32>
    %cst_1 = arith.constant dense<0.000000e+00> : vector<8xf32>
    %6 = vector.multi_reduction <add>, %5, %cst_1 [1] : vector<8x32xf32> to vector<8xf32>
    %7 = vector.shape_cast %6 : vector<8xf32> to vector<8x1xf32>
    %8 = math.log %7 : vector<8x1xf32>
    %c0_2 = arith.constant 0 : index
    %c0_3 = arith.constant 0 : index
    %9 = vector.load %arg2[%c0_2, %c0_3] : memref<8x1xi32, #tpu.memory_space<vmem>>, vector<8x1xi32>
    %c0_4 = arith.constant 0 : index
    %c0_5 = arith.constant 0 : index
    %10 = vector.load %arg3[%c0_4, %c0_5] : memref<8x1xi32, #tpu.memory_space<vmem>>, vector<8x1xi32>
    %c0_6 = arith.constant 0 : index
    %c0_7 = arith.constant 0 : index
    %11 = vector.load %arg4[%c0_6, %c0_7] : memref<8x1xf32, #tpu.memory_space<vmem>>, vector<8x1xf32>
    %12 = tpu.iota {dimensions = array<i32: 1>} : vector<8x32xi32>
    %13 = vector.broadcast %9 : vector<8x1xi32> to vector<8x32xi32>
    %14 = arith.cmpi eq, %12, %13 : vector<8x32xi32>
    %cst_8 = arith.constant 0.000000e+00 : f32
    %15 = vector.shape_cast %11 : vector<8x1xf32> to vector<8x1xf32>
    %16 = vector.broadcast %15 : vector<8x1xf32> to vector<8x32xf32>
    %17 = vector.broadcast %cst_8 : f32 to vector<8x32xf32>
    %18 = arith.select %14, %16, %17 : vector<8x32xi1>, vector<8x32xf32>
    %19 = vector.broadcast %10 : vector<8x1xi32> to vector<8x32xi32>
    %20 = arith.cmpi eq, %12, %19 : vector<8x32xi32>
    %cst_9 = arith.constant 1.000000e+00 : f32
    %21 = vector.broadcast %cst_9 : f32 to vector<8x1xf32>
    %22 = arith.subf %21, %11 : vector<8x1xf32>
    %cst_10 = arith.constant 0.000000e+00 : f32
    %23 = vector.shape_cast %22 : vector<8x1xf32> to vector<8x1xf32>
    %24 = vector.broadcast %23 : vector<8x1xf32> to vector<8x32xf32>
    %25 = vector.broadcast %cst_10 : f32 to vector<8x32xf32>
    %26 = arith.select %20, %24, %25 : vector<8x32xi1>, vector<8x32xf32>
    %27 = arith.addf %18, %26 : vector<8x32xf32>
    %28 = arith.mulf %27, %4 : vector<8x32xf32>
    %cst_11 = arith.constant dense<0.000000e+00> : vector<8xf32>
    %29 = vector.multi_reduction <add>, %28, %cst_11 [1] : vector<8x32xf32> to vector<8xf32>
    %30 = vector.shape_cast %29 : vector<8xf32> to vector<8x1xf32>
    %31 = arith.subf %8, %30 : vector<8x1xf32>
    %c8_i32 = arith.constant 8 : i32
    %32 = arith.muli %arg0, %c8_i32 : i32
    %33 = tpu.iota {dimensions = array<i32: 0>} : vector<8x1xi32>
    %34 = vector.broadcast %32 : i32 to vector<8x1xi32>
    %35 = arith.addi %34, %33 : vector<8x1xi32>
    %c8_i32_12 = arith.constant 8 : i32
    %36 = vector.broadcast %c8_i32_12 : i32 to vector<8x1xi32>
    %37 = arith.cmpi slt, %35, %36 : vector<8x1xi32>
    %cst_13 = arith.constant 0.000000e+00 : f32
    %38 = vector.broadcast %cst_13 : f32 to vector<8x1xf32>
    %39 = arith.select %37, %31, %38 : vector<8x1xi1>, vector<8x1xf32>
    %c0_14 = arith.constant 0 : index
    %c0_15 = arith.constant 0 : index
    %40 = vector.load %arg5[%c0_14, %c0_15] : memref<8x1xf32, #tpu.memory_space<vmem>>, vector<8x1xf32>
    tpu.vector_store %arg5[%c0_14, %c0_15], %39 {strides = array<i32>} : memref<8x1xf32, #tpu.memory_space<vmem>>, vector<8x1xf32>,
    return
  }
  func.func @transform_0(%arg0: i32) -> (i32, i32) {
    %c0_i32 = arith.constant 0 : i32
    %c0_i32_0 = arith.constant 0 : i32
    return %arg0, %c0_i32 : i32, i32
  }
  func.func @transform_1(%arg0: i32) -> (i32, i32) {
    %c0_i32 = arith.constant 0 : i32
    %c0_i32_0 = arith.constant 0 : i32
    return %arg0, %c0_i32 : i32, i32
  }
  func.func @transform_2(%arg0: i32) -> (i32, i32) {
    %c0_i32 = arith.constant 0 : i32
    %c0_i32_0 = arith.constant 0 : i32
    return %arg0, %c0_i32 : i32, i32
  }
  func.func @transform_3(%arg0: i32) -> (i32, i32) {
    %c0_i32 = arith.constant 0 : i32
    %c0_i32_0 = arith.constant 0 : i32
    return %arg0, %c0_i32 : i32, i32
  }
  func.func @transform_4(%arg0: i32) -> (i32, i32) {
    %c0_i32 = arith.constant 0 : i32
    %c0_i32_0 = arith.constant 0 : i32
    return %arg0, %c0_i32 : i32, i32
  }
}

</mosaic_0001>

<bundles_post_ra>
// kernel: mixup_loss.1
= control target key start
LH: loop header
LB: loop body
LE: loop exit
PB: predicated region body
PF: predicated region fallthrough
CT: control target
= control target key end

     0   :  { %vm18_vm0 = vcmask 261120   ;;  %v83_v1 = vmov 0   ;;  %v33_v10 = vlaneseq  ;;  %vm69_vm3 = vcmask 7168   ;;  %s127_s0 = inlined_call_operand.vmem [shape: f32[8,32], index: 0, kind: input, shape index: {}]   ;;  %s128_s2 = inlined_call_operand.vmem [shape: s32[8,1], index: 2, kind: input, shape index: {}]   ;;  %s129_s3 = inlined_call_operand.vmem [shape: f32[8,1], index: 3, kind: input, shape index: {}]   ;;  %s130_s1 = inlined_call_operand.vmem [shape: s32[8,1], index: 1, kind: input, shape index: {}]   ;;  %s131_s4 = inlined_call_operand.vmem [shape: f32[8,1], index: 4, kind: output, shape index: {}]  }
   0x1   :  { %v17_v0 = vld [vmem:[%s127_s0] sm:$0xff]  ;;  %77 = vset.pattern.permute.xlu1 %v83_v1  ;;  %76 = vset.pattern.permute.xlu0 %v83_v1 }
   0x2   :  { %v31_v2 = vld [vmem:[%s128_s2] sm:$0xff]  ;;  %v19_v4 = vsel %vm18_vm0, %v17_v0, -inf  ;;  %78 = vset.pattern.permute.xlu2 %v83_v1  ;;  %v34_v14 = vand.u32 127, %v33_v10 }
   0x3   :  { %v32_v3 = vld [vmem:[%s129_s3] sm:$0xff]  ;;  %46 = vperm.xlu1 %77, %v31_v2   ;;  %20 = vmax.xlane.f32.xlu0 %v19_v4 }
   0x4   :  { %v49_v5 = vsub.f32 1.0, %v32_v3  ;;  %v30_v6 = vld [vmem:[%s130_s1] sm:$0xff] }
   0x6   :  { %52 = vperm.xlu2 %78, %v49_v5  }
   0xb   :  { %41 = vperm.xlu1 %77, %v32_v3  }
  0x17   :  { %36 = vperm.xlu0 %76, %v30_v6  }
  0x60   :  { %v53_v15 = vpop.permute.xlu2 %52 }
  0x75   :  { %v47_v11 = vpop.permute.xlu1 %46 }
  0x76   :  { %v21_v7 = vpop.xlane.xlu0 %20  ;;  %vm48_vm1 = vcmp.eq.s32.totalorder %v34_v14, %v47_v11 }
  0x77   :  { %v22_v8 = vsub.f32 %v17_v0, %v21_v7  ;;  %v55_v18 = vsel %vm48_vm1, %v53_v15, 0.0 }
  0x79   :  { %v23_v9 = vmul.f32 1.442695, %v22_v8 }
  0x7b   :  { %79 = vpow2.f32 %v23_v9 }
  0x7d   :  { %v42_v17 = vpop.permute.xlu1 %41 }
  0x81   :  { %v80_v12 = vpop.eup %79 }
  0x82   :  { %v25_v13 = vsel %vm18_vm0, %v80_v12, 0.0 }
  0x83   :  { %26 = vadd.xlane.f32.xlu2 %v25_v13 }
  0x89   :  { %v37_v16 = vpop.permute.xlu0 %36 }
  0x8a   :  { %vm38_vm2 = vcmp.eq.s32.totalorder %v34_v14, %v37_v16 }
  0x8b   :  { %v44_v19 = vsel %vm38_vm2, %v42_v17, 0.0 }
  0x8c   :  { %v56_v20 = vadd.f32 %v55_v18, %v44_v19 }
  0x8e   :  { %v57_v21 = vmul.f32 %v56_v20, %v22_v8 }
  0x90   :  { %v58_v22 = vsel %vm18_vm0, %v57_v21, 0.0 }
  0x91   :  { %59 = vadd.xlane.f32.xlu1 %v58_v22 }
  0xf6   :  { %v27_v23 = vpop.xlane.xlu2 %26 }
  0xf7   :  { %81 = vlog2.f32 %v27_v23 }
  0xfd   :  { %v82_v24 = vpop.eup %81 }
  0xfe   :  { %v29_v25 = vmul.f32 0.6931472, %v82_v24 }
 0x104   :  { %v60_v26 = vpop.xlane.xlu1 %59 }
 0x105   :  { %v61_v27 = vsub.f32 %v29_v25, %v60_v26 }
 0x107   :  { %70 = vst.msk [vmem:[%s131_s4] sm:$0xff] %vm69_vm3, %v61_v27 }

</bundles_post_ra>
